<compile_context>
chip_gen: v5e
topology: v5e:2x2
jax: 0.10.0
libtpu: 0.0.40
codegen_flags: <defaults>
</compile_context>

<pallas_src>
import functools

import jax
import jax.numpy as jnp
from jax import lax
from jax.experimental import pallas as pl
from jax.experimental.pallas import tpu as pltpu


def _ce_ls_kernel(logits_ref, targets_ref, rowloss_ref, *,
                  epsilon, num_classes, batch_size, block_b):
    # logits_ref:  (Bt, C)  model dtype, VMEM
    # targets_ref: (Bt, 1)  int32, VMEM
    # rowloss_ref: (Bt, 1)  float32, VMEM (per-row loss; padded rows -> 0)
    i = pl.program_id(0)

    x = logits_ref[...].astype(jnp.float32)  # cast after load; f32 math everywhere
    t = targets_ref[...]                     # (Bt, 1)
    bt, c = x.shape

    # Mask for the (possibly ragged) last tile: padded rows must contribute 0.
    row = lax.broadcasted_iota(jnp.int32, (bt, 1), 0)
    valid = (i * block_b + row) < batch_size           # (Bt, 1) bool
    x = jnp.where(valid, x, 0.0)                       # keep exp/max on clean data

    # Numerically stable logsumexp per row (XLU reductions + one EUP exp pass).
    m = jnp.max(x, axis=1, keepdims=True)
    lse = jnp.log(jnp.sum(jnp.exp(x - m), axis=1, keepdims=True)) + m  # (Bt, 1)

    # x[b, t_b] via masked reduce; sum_c x[b, c] directly.  No (Bt, C) temporaries
    # for one-hot / smoothed / log_probs are ever materialized.
    col = lax.broadcasted_iota(jnp.int32, (bt, c), 1)
    x_tgt = jnp.sum(jnp.where(col == t, x, 0.0), axis=1, keepdims=True)  # (Bt, 1)
    x_sum = jnp.sum(x, axis=1, keepdims=True)                            # (Bt, 1)

    # loss_b = -(1-eps)*(x_tgt - lse) - (eps/C)*(x_sum - C*lse)
    loss_row = (-(1.0 - epsilon) * (x_tgt - lse)
                - (epsilon / num_classes) * (x_sum - num_classes * lse))
    rowloss_ref[...] = jnp.where(valid, loss_row, 0.0)


def cross_entropy_label_smooth(inputs, targets, *, num_classes, epsilon,
                               block_b=None):
    """inputs: (B, num_classes) float (any dtype), targets: (B,) int -> scalar f32 loss."""
    B, C = inputs.shape
    assert C == num_classes
    targets2d = targets.astype(jnp.int32).reshape(B, 1)

    # Pick a batch tile: biggest reasonable tile, sublane-aligned (multiple of 8),
    # or the whole batch if it is small.
    if block_b is None:
        block_b = B if B <= 512 else 512
    if block_b < B:
        block_b = max(8, (block_b // 8) * 8)
    block_b = min(block_b, B) if B % 8 == 0 or block_b == B else block_b
    num_tiles = pl.cdiv(B, block_b)

    # VMEM budget: double-buffered input tiles + targets + per-row output, with margin.
    itemsize = jnp.dtype(inputs.dtype).itemsize
    tile_bytes = block_b * C * itemsize + block_b * 4 + block_b * 4
    vmem_limit = int(min(max(2 * tile_bytes + (2 << 20), 16 << 20), 48 << 20))

    kernel = functools.partial(
        _ce_ls_kernel,
        epsilon=float(epsilon),
        num_classes=int(num_classes),
        batch_size=int(B),
        block_b=int(block_b),
    )

    per_row = pl.pallas_call(
        kernel,
        out_shape=jax.ShapeDtypeStruct((B, 1), jnp.float32),
        grid=(num_tiles,),
        in_specs=[
            pl.BlockSpec((block_b, C), lambda i: (i, 0)),   # logits tile
            pl.BlockSpec((block_b, 1), lambda i: (i, 0)),   # targets tile
        ],
        out_specs=pl.BlockSpec((block_b, 1), lambda i: (i, 0)),
        compiler_params=pltpu.CompilerParams(
            dimension_semantics=("parallel",),
            vmem_limit_bytes=vmem_limit,
        ),
    )(inputs, targets2d)

    # Tiny finalize in the wrapper: global sum and multiply by 1/B (global batch size).
    return jnp.sum(per_row) * (1.0 / B)


def _reference(inputs, targets, num_classes, epsilon):
    logp = jax.nn.log_softmax(inputs.astype(jnp.float32), axis=1)
    onehot = jax.nn.one_hot(targets, num_classes, dtype=jnp.float32)
    smoothed = (1.0 - epsilon) * onehot + epsilon / num_classes
    return -(smoothed * logp).mean(0).sum()


if __name__ == "__main__":
    num_classes = 16
    epsilon = 0.1
    B = 20  # deliberately NOT a multiple of the tile size -> exercises ragged masking

    key = jax.random.PRNGKey(0)
    k1, k2 = jax.random.split(key)
    # Feed bf16 logits directly (no wrapper up-cast); kernel casts to f32 after load.
    inputs = jax.random.normal(k1, (B, num_classes), dtype=jnp.float32).astype(jnp.bfloat16)
    targets = jax.random.randint(k2, (B,), 0, num_classes, dtype=jnp.int32)

    loss = cross_entropy_label_smooth(
        inputs, targets, num_classes=num_classes, epsilon=epsilon, block_b=8
    )
    loss = jax.block_until_ready(loss)

    ref = _reference(inputs, targets, num_classes, epsilon)
    assert jnp.allclose(loss, ref, atol=1e-5, rtol=1e-4), (loss, ref)

    print("KERNEL_OK")
</pallas_src>

<mosaic_0001>
module attributes {stable_mosaic.version = 11 : i64} {
  func.func @_ce_ls_kernel(%arg0: i32, %arg1: memref<8x16xbf16, #tpu.memory_space<vmem>>, %arg2: memref<8x1xi32, #tpu.memory_space<vmem>>, %arg3: memref<8x1xf32, #tpu.memory_space<vmem>>) attributes {dimension_semantics = [#tpu.dimension_semantics<parallel>], iteration_bounds = array<i64: 3>, scalar_prefetch = 0 : i64, scratch_operands = 0 : i64, tpu.core_type = #tpu.core_type<tc>, window_params = [{transform_indices = @transform_0, window_bounds = array<i64: 8, 16>}, {transform_indices = @transform_1, window_bounds = array<i64: 8, 1>}, {transform_indices = @transform_2, window_bounds = array<i64: 8, 1>}]} {
    %c0 = arith.constant 0 : index
    %c0_0 = arith.constant 0 : index
    %0 = vector.load %arg1[%c0, %c0_0] : memref<8x16xbf16, #tpu.memory_space<vmem>>, vector<8x16xbf16>
    %1 = arith.extf %0 : vector<8x16xbf16> to vector<8x16xf32>
    %c0_1 = arith.constant 0 : index
    %c0_2 = arith.constant 0 : index
    %2 = vector.load %arg2[%c0_1, %c0_2] : memref<8x1xi32, #tpu.memory_space<vmem>>, vector<8x1xi32>
    %3 = tpu.iota {dimensions = array<i32: 0>} : vector<8x1xi32>
    %c8_i32 = arith.constant 8 : i32
    %4 = arith.muli %arg0, %c8_i32 : i32
    %5 = vector.broadcast %4 : i32 to vector<8x1xi32>
    %6 = arith.addi %5, %3 : vector<8x1xi32>
    %c20_i32 = arith.constant 20 : i32
    %7 = vector.broadcast %c20_i32 : i32 to vector<8x1xi32>
    %8 = arith.cmpi slt, %6, %7 : vector<8x1xi32>
    %cst = arith.constant 0.000000e+00 : f32
    %9 = vector.shape_cast %8 : vector<8x1xi1> to vector<8x1xi1>
    %10 = vector.broadcast %9 : vector<8x1xi1> to vector<8x16xi1>
    %11 = vector.broadcast %cst : f32 to vector<8x16xf32>
    %12 = arith.select %10, %1, %11 : vector<8x16xi1>, vector<8x16xf32>
    %cst_3 = arith.constant dense<0xFF800000> : vector<8xf32>
    %13 = vector.multi_reduction <maximumf>, %12, %cst_3 [1] : vector<8x16xf32> to vector<8xf32>
    %14 = vector.shape_cast %13 : vector<8xf32> to vector<8x1xf32>
    %15 = vector.broadcast %14 : vector<8x1xf32> to vector<8x16xf32>
    %16 = arith.subf %12, %15 : vector<8x16xf32>
    %17 = math.exp %16 : vector<8x16xf32>
    %cst_4 = arith.constant dense<0.000000e+00> : vector<8xf32>
    %18 = vector.multi_reduction <add>, %17, %cst_4 [1] : vector<8x16xf32> to vector<8xf32>
    %19 = vector.shape_cast %18 : vector<8xf32> to vector<8x1xf32>
    %20 = math.log %19 : vector<8x1xf32>
    %21 = arith.addf %20, %14 : vector<8x1xf32>
    %22 = tpu.iota {dimensions = array<i32: 1>} : vector<8x16xi32>
    %23 = vector.broadcast %2 : vector<8x1xi32> to vector<8x16xi32>
    %24 = arith.cmpi eq, %22, %23 : vector<8x16xi32>
    %cst_5 = arith.constant 0.000000e+00 : f32
    %25 = vector.broadcast %cst_5 : f32 to vector<8x16xf32>
    %26 = arith.select %24, %12, %25 : vector<8x16xi1>, vector<8x16xf32>
    %cst_6 = arith.constant dense<0.000000e+00> : vector<8xf32>
    %27 = vector.multi_reduction <add>, %26, %cst_6 [1] : vector<8x16xf32> to vector<8xf32>
    %28 = vector.shape_cast %27 : vector<8xf32> to vector<8x1xf32>
    %cst_7 = arith.constant dense<0.000000e+00> : vector<8xf32>
    %29 = vector.multi_reduction <add>, %12, %cst_7 [1] : vector<8x16xf32> to vector<8xf32>
    %30 = vector.shape_cast %29 : vector<8xf32> to vector<8x1xf32>
    %31 = arith.subf %28, %21 : vector<8x1xf32>
    %cst_8 = arith.constant -0.899999976 : f32
    %32 = vector.broadcast %cst_8 : f32 to vector<8x1xf32>
    %33 = arith.mulf %32, %31 : vector<8x1xf32>
    %cst_9 = arith.constant 1.600000e+01 : f32
    %34 = vector.broadcast %cst_9 : f32 to vector<8x1xf32>
    %35 = arith.mulf %34, %21 : vector<8x1xf32>
    %36 = arith.subf %30, %35 : vector<8x1xf32>
    %cst_10 = arith.constant 6.250000e-03 : f32
    %37 = vector.broadcast %cst_10 : f32 to vector<8x1xf32>
    %38 = arith.mulf %37, %36 : vector<8x1xf32>
    %39 = arith.subf %33, %38 : vector<8x1xf32>
    %cst_11 = arith.constant 0.000000e+00 : f32
    %40 = vector.broadcast %cst_11 : f32 to vector<8x1xf32>
    %41 = arith.select %8, %39, %40 : vector<8x1xi1>, vector<8x1xf32>
    %c0_12 = arith.constant 0 : index
    %c0_13 = arith.constant 0 : index
    %42 = vector.load %arg3[%c0_12, %c0_13] : memref<8x1xf32, #tpu.memory_space<vmem>>, vector<8x1xf32>
    tpu.vector_store %arg3[%c0_12, %c0_13], %41 {strides = array<i32>} : memref<8x1xf32, #tpu.memory_space<vmem>>, vector<8x1xf32>,
    return
  }
  func.func @transform_0(%arg0: i32) -> (i32, i32) {
    %c0_i32 = arith.constant 0 : i32
    %c0_i32_0 = arith.constant 0 : i32
    return %arg0, %c0_i32 : i32, i32
  }
  func.func @transform_1(%arg0: i32) -> (i32, i32) {
    %c0_i32 = arith.constant 0 : i32
    %c0_i32_0 = arith.constant 0 : i32
    return %arg0, %c0_i32 : i32, i32
  }
  func.func @transform_2(%arg0: i32) -> (i32, i32) {
    %c0_i32 = arith.constant 0 : i32
    %c0_i32_0 = arith.constant 0 : i32
    return %arg0, %c0_i32 : i32, i32
  }
}

</mosaic_0001>

<bundles_post_ra>
// kernel: tpu_custom_call.1
= control target key start
LH: loop header
LB: loop body
LE: loop exit
PB: predicated region body
PF: predicated region fallthrough
CT: control target
= control target key end

     0   :  { %s317_s9 = smov 0   ;;  %s351_s0 = inlined_call_operand.vmem [shape: bf16[20,16], index: 0, kind: input, shape index: {}]   ;;  %s352_s1 = inlined_call_operand.vmem [shape: s32[20,1], index: 1, kind: input, shape index: {}]   ;;  %s353_s2 = inlined_call_operand.vmem [shape: f32[20,1], index: 2, kind: output, shape index: {}]  }
   0x1 LB: > { %s268_s10 = sadd.s32 4294967295, %s299_s9   ;;  %p272_p0 = scmp.ge.s32.totalorder %s299_s9, 1  ;;  %s299_s9 = sphi %s317_s9, %s12_s9  }
   0x2   : > { %p120_p1 = scmp.lt.s32.totalorder %s299_s9, 4 }
   0x4   : > { %p121_p2 = pnand %p272_p0, %p120_p1 }
   0x5   : > { %p144_p3 = scmp.lt.s32.totalorder (!%p121_p2), %s268_s10, 2  ;;  %s276_s11 = sshll.u32 (!%p121_p2), %s268_s10, 3 }
   0x6   : > { %124 = sbr.rel (%p121_p2) target bundleno = 285 (0x11d), region = 28 }
   0xb   : > { %v159_v0 = vlaneseq  ;;  %v162_v1 = vstv %s276_s11  ;;  %v301_v2 = vmov 0   ;;  %s355_s10 = smov (!%p144_p3, %s268_s10), 2  ;;  %vm168_vm1 = vcmask 130048  }
   0xc   : > { %288 = vset.pattern.permute.xlu0 %v301_v2  ;;  %s273_s12 = sshll.u32 %s355_s10, 2  ;;  %s274_s16 = sshll.u32 %s355_s10, 3  ;;  %vm201_vm3 = vcmask 7168  }
   0xd   : > { %v160_v3 = vshrl.u32 %v159_v0, 7  ;;  %s147_s15 = scalar_lea.vmem %s351_s0, %s273_s12  ;;  %s151_s19 = scalar_lea.vmem %s352_s1, %s274_s16  ;;  %v182_v16 = vand.u32 127, %v159_v0 }
   0xe   : > { %v156_v5 = vld [vmem:[%s147_s15] sm:$0xf]  ;;  %s155_s22 = scalar_lea.vmem %s353_s2, %s274_s16 }
   0xf   : > { %v163_v4 = vadd.s32 %v162_v1, %v160_v3  ;;  %v157_v6 = vunpack.c.l.bf16 %v156_v5  ;;  %v158_v9 = vld [vmem:[%s151_s19] sm:$0xff] }
  0x11   : > { %vm164_vm0 = vcmp.lt.s32.totalorder %v163_v4, 20 }
  0x12   : > { %v167_v7 = vsel %vm164_vm0, %v157_v6, 0.0 }
  0x13   : > { %v169_v8 = vsel %vm168_vm1, %v167_v7, -inf  ;;  %v191_v10 = vsel %vm168_vm1, %v167_v7, 0.0 }
  0x14   : > { %170 = vmax.xlane.f32.xlu0 %v169_v8  ;;  %192 = vadd.xlane.f32.xlu2 %v191_v10 }
  0x28   : > { %184 = vperm.xlu0 %288, %v158_v9  }
  0x87   : > { %v171_v11 = vpop.xlane.xlu0 %170  ;;  %v193_v25 = vpop.xlane.xlu2 %192 }
  0x88   : > { %v172_v12 = vsub.f32 %v167_v7, %v171_v11 }
  0x8a   : > { %v173_v13 = vmul.f32 1.442695, %v172_v12 }
  0x8c   : > { %289 = vpow2.f32 %v173_v13 }
  0x92   : > { %v290_v14 = vpop.eup %289 }
  0x93   : > { %v175_v15 = vsel %vm168_vm1, %v290_v14, 0.0 }
  0x94   : > { %176 = vadd.xlane.f32.xlu1 %v175_v15 }
  0x9a   : > { %v185_v17 = vpop.permute.xlu0 %184 }
  0x9b   : > { %vm186_vm2 = vcmp.eq.s32.totalorder %v182_v16, %v185_v17 }
  0x9c   : > { %v187_v18 = vsel %vm186_vm2, %v167_v7, 0.0 }
  0x9d   : > { %v188_v19 = vsel %vm168_vm1, %v187_v18, 0.0 }
  0x9e   : > { %189 = vadd.xlane.f32.xlu1 %v188_v19 }
 0x107   : > { %v177_v20 = vpop.xlane.xlu1 %176 }
 0x108   : > { %291 = vlog2.f32 %v177_v20 }
 0x10e   : > { %v292_v21 = vpop.eup %291 }
 0x10f   : > { %v179_v22 = vmul.f32 0.6931472, %v292_v21 }
 0x111   : > { %v180_v23 = vadd.f32 %v179_v22, %v171_v11  ;;  %v190_v24 = vpop.xlane.xlu1 %189 }
 0x113   : > { %v194_v26 = vsub.f32 %v190_v24, %v180_v23  ;;  %v196_v27 = vmul.f32 16.0, %v180_v23 }
 0x115   : > { %v197_v28 = vsub.f32 %v193_v25, %v196_v27  ;;  %v195_v29 = vmul.f32 -0.9, %v194_v26 }
 0x117   : > { %v198_v30 = vmul.f32 0.00625, %v197_v28 }
 0x119   : > { %v199_v31 = vsub.f32 %v195_v29, %v198_v30 }
 0x11b   : > { %v200_v32 = vsel %vm164_vm0, %v199_v31, 0.0 }
 0x11c   : > { %202 = vst.msk [vmem:[%s155_s22] sm:$0xff] %vm201_vm3, %v200_v32 }
 0x11d PF: > { %s12_s9 = sadd.s32 1, %s299_s9  }
 0x11e   : > { %p9_p4 = scmp.ge.s32.totalorder %s12_s9, 5  }
 0x120   :  { %11 = sbr.rel (!%p9_p4) target bundleno = 1 (0x1), region = 61 }

</bundles_post_ra>
